<compile_context>
chip_gen: v7x
topology: tpu7x:2x2x1
jax: 0.10.0
libtpu: 0.0.40
codegen_flags: <defaults>
</compile_context>

<pallas_src>
import functools

import jax
import jax.numpy as jnp
from jax import lax
from jax.experimental import pallas as pl
from jax.experimental.pallas import tpu as pltpu

_LANES = 512          # slab last dim: multiple of 128 -> unmasked wide vst / DMA
_BLOCK_SUPER = 256    # super-rows per grid step (4 MiB / input for f32 or bf16)
_UNROLL = 8           # fori_loop unroll factor inside the kernel


def _cdiv(a, b):
    return (a + b - 1) // b


def _sublanes_for(dtype):
    """Full-vreg sublane packing: 8 for 4-byte, 16 for 2-byte, 32 for 1-byte."""
    return max(8, 32 // jnp.dtype(dtype).itemsize)


def _pow_static(x, gamma):
    """x ** gamma with static gamma; integer gammas are plain VPU multiplies."""
    g = float(gamma)
    if g == 0.0:
        return jnp.ones_like(x)
    if g > 0 and g == float(int(g)):
        y = x
        for _ in range(int(g) - 1):   # unrolled at trace time
            y = y * x
        return y
    # TODO(synk): non-integer gamma falls back to pow (exp/log on the EUP).
    return x ** g


def _focal_elementwise_f32(x, t, alpha, gamma):
    # Numerically stable BCE-with-logits (matches F.binary_cross_entropy_with_logits).
    bce = jnp.maximum(x, 0.0) - x * t + jnp.log1p(jnp.exp(-jnp.abs(x)))
    pt = jnp.exp(-bce)
    return alpha * _pow_static(1.0 - pt, gamma) * bce


def _focal_partial_kernel(x_ref, t_ref, p_ref, *, alpha, gamma, block_super,
                          n_valid_rows, needs_mask, unroll):
    # x_ref/t_ref: (block_super, SUB, LANES); p_ref: (SUB, LANES) per-block
    # partial sum.  Accumulate one super-row per iteration so the live set
    # stays in vregs (no block-sized intermediates).
    row0 = pl.program_id(0) * block_super

    def body(k, acc):
        x = x_ref[k].astype(jnp.float32)
        t = t_ref[k].astype(jnp.float32)
        if needs_mask:
            # Mask the ragged last grid block BEFORE the math: sentinel
            # (x=100, t=1) drives bce->0, pt->1, focal term -> exactly 0.
            valid = (row0 + k) < n_valid_rows
            x = jnp.where(valid, x, 100.0)
            t = jnp.where(valid, t, 1.0)
        return acc + _focal_elementwise_f32(x, t, alpha, gamma)

    acc0 = jnp.zeros(p_ref.shape, jnp.float32)
    p_ref[...] = lax.fori_loop(0, block_super, body, acc0, unroll=unroll)


def _focal_none_kernel(x_ref, t_ref, o_ref, *, alpha, gamma, block_super, unroll):
    # Out-of-bounds rows of a ragged last block are computed but dropped by the
    # bounds-limited output DMA, so no masking is needed on this path.
    def body(k, carry):
        x = x_ref[k].astype(jnp.float32)
        t = t_ref[k].astype(jnp.float32)
        o_ref[k] = _focal_elementwise_f32(x, t, alpha, gamma).astype(o_ref.dtype)
        return carry

    lax.fori_loop(0, block_super, body, 0, unroll=unroll)


def focal_loss(inputs, targets, alpha=1.0, gamma=2.0, reduction="mean",
               block_super=_BLOCK_SUPER, unroll=_UNROLL):
    """Pallas TPU focal loss matching the PyTorch FocalLoss.forward."""
    orig_shape = inputs.shape
    total = int(inputs.size)

    sub = _sublanes_for(inputs.dtype)          # dtype-aware sublane packing
    chunk = sub * _LANES                       # elements per super-row
    n_super = _cdiv(total, chunk)

    # Cap the block so the grid has >=2 steps whenever possible (lets the v7x
    # megacore split the parallel axis) and never exceeds the row count.
    block_super = max(1, min(int(block_super), max(1, _cdiv(n_super, 2))))
    num_blocks = _cdiv(n_super, block_super)
    padded = n_super * chunk
    needs_mask = (n_super % block_super) != 0  # ragged last grid block
    unroll = max(1, min(int(unroll), block_super))

    x = inputs.reshape(-1)
    t = targets.reshape(-1)
    if padded != total:
        # Pad only to the chunk boundary (< 1 chunk), never to a block_super
        # multiple.  Sentinel (x=100, t=1) contributes exactly 0 to the focal
        # term, so no element-level mask is needed for the tail.
        # TODO(synk): eliminating this single concatenate copy entirely would
        # need a ragged 1-D BlockSpec for the flat input.
        pad = padded - total
        x = jnp.concatenate([x, jnp.full((pad,), 100.0, dtype=x.dtype)])
        t = jnp.concatenate([t, jnp.ones((pad,), dtype=t.dtype)])

    x3 = x.reshape(n_super, sub, _LANES)
    t3 = t.reshape(n_super, sub, _LANES)

    grid = (num_blocks,)
    in_blk = pl.BlockSpec((block_super, sub, _LANES), lambda i: (i, 0, 0))
    cparams = pltpu.CompilerParams(
        dimension_semantics=("parallel",),
        vmem_limit_bytes=32 * 1024 * 1024,
    )

    if reduction in ("mean", "sum"):
        kernel = functools.partial(
            _focal_partial_kernel, alpha=float(alpha), gamma=gamma,
            block_super=block_super, n_valid_rows=n_super,
            needs_mask=needs_mask, unroll=unroll)
        partials = pl.pallas_call(
            kernel,
            out_shape=jax.ShapeDtypeStruct((num_blocks * sub, _LANES),
                                           jnp.float32),
            grid_spec=pltpu.PrefetchScalarGridSpec(
                num_scalar_prefetch=0,
                grid=grid,
                in_specs=[in_blk, in_blk],
                out_specs=pl.BlockSpec((sub, _LANES), lambda i: (i, 0)),
            ),
            compiler_params=cparams,
        )(x3, t3)
        s = jnp.sum(partials)                  # tiny host-side reduce
        if reduction == "mean":
            return s / jnp.float32(total)
        return s
    else:  # 'none'
        kernel = functools.partial(
            _focal_none_kernel, alpha=float(alpha), gamma=gamma,
            block_super=block_super, unroll=unroll)
        out = pl.pallas_call(
            kernel,
            out_shape=jax.ShapeDtypeStruct((n_super, sub, _LANES),
                                           inputs.dtype),
            grid_spec=pltpu.PrefetchScalarGridSpec(
                num_scalar_prefetch=0,
                grid=grid,
                in_specs=[in_blk, in_blk],
                out_specs=pl.BlockSpec((block_super, sub, _LANES),
                                       lambda i: (i, 0, 0)),
            ),
            compiler_params=cparams,
        )(x3, t3)
        if padded == total:
            return out.reshape(orig_shape)     # zero-copy path
        return out.reshape(-1)[:total].reshape(orig_shape)


def focal_loss_ref(inputs, targets, alpha=1.0, gamma=2.0, reduction="mean"):
    """Pure-JAX reference mirroring the PyTorch module."""
    x = inputs.astype(jnp.float32)
    t = targets.astype(jnp.float32)
    bce = jnp.maximum(x, 0.0) - x * t + jnp.log1p(jnp.exp(-jnp.abs(x)))
    pt = jnp.exp(-bce)
    fl = alpha * (1.0 - pt) ** gamma * bce
    if reduction == "mean":
        return jnp.mean(fl)
    elif reduction == "sum":
        return jnp.sum(fl)
    return fl


if __name__ == "__main__":
    key = jax.random.PRNGKey(0)
    k1, k2, k3, k4, k5, k6 = jax.random.split(key, 6)

    # NCHW logits and binary targets: (2, 4, 16, 16) -> 2048 elements.
    x = jax.random.normal(k1, (2, 4, 16, 16), dtype=jnp.float32) * 2.0
    t = (jax.random.uniform(k2, (2, 4, 16, 16)) > 0.5).astype(jnp.float32)

    # FocalLoss(alpha=1, gamma=2, reduction='mean')
    out = jax.block_until_ready(
        focal_loss(x, t, alpha=1.0, gamma=2.0, reduction="mean"))
    ref = focal_loss_ref(x, t, alpha=1.0, gamma=2.0, reduction="mean")
    assert jnp.allclose(out, ref, rtol=1e-5, atol=1e-6), (out, ref)

    # 'sum' and 'none' paths.
    out_sum = jax.block_until_ready(focal_loss(x, t, reduction="sum"))
    assert jnp.allclose(out_sum, focal_loss_ref(x, t, reduction="sum"),
                        rtol=1e-5, atol=1e-4)
    out_none = jax.block_until_ready(focal_loss(x, t, reduction="none"))
    assert jnp.allclose(out_none, focal_loss_ref(x, t, reduction="none"),
                        rtol=1e-5, atol=1e-6)

    # Odd shape (not a multiple of one chunk) -> exercises the tail padding path.
    xo = jax.random.normal(k3, (2, 3, 15, 17), dtype=jnp.float32)
    to = (jax.random.uniform(k4, (2, 3, 15, 17)) > 0.5).astype(jnp.float32)
    out_odd = jax.block_until_ready(focal_loss(xo, to, reduction="mean"))
    assert jnp.allclose(out_odd, focal_loss_ref(xo, to, reduction="mean"),
                        rtol=1e-5, atol=1e-6), (out_odd,)

    # Multi-block grid with a ragged last block -> exercises the in-kernel
    # row-mask path (no host padding: 4*8*60*64 = 122880 = 30 chunks exactly).
    xl = jax.random.normal(k5, (4, 8, 60, 64), dtype=jnp.float32)
    tl = (jax.random.uniform(k6, (4, 8, 60, 64)) > 0.5).astype(jnp.float32)
    out_l = jax.block_until_ready(
        focal_loss(xl, tl, reduction="mean", block_super=7))
    assert jnp.allclose(out_l, focal_loss_ref(xl, tl, reduction="mean"),
                        rtol=1e-4, atol=1e-5), (out_l,)

    # bf16 inputs -> 16-sublane packed slab (f32 internal compute).
    xb = xl.astype(jnp.bfloat16)
    out_b = jax.block_until_ready(focal_loss(xb, tl, reduction="mean"))
    ref_b = focal_loss_ref(xb, tl, reduction="mean")
    assert jnp.allclose(out_b, ref_b, rtol=1e-4, atol=1e-5), (out_b, ref_b)

    print("KERNEL_OK")
</pallas_src>

<mosaic_0001>
module attributes {stable_mosaic.version = 11 : i64} {
  func.func @_focal_partial_kernel(%arg0: i32, %arg1: memref<1x8x512xf32, #tpu.memory_space<vmem>>, %arg2: memref<1x8x512xf32, #tpu.memory_space<vmem>>, %arg3: memref<8x512xf32, #tpu.memory_space<vmem>>) attributes {dimension_semantics = [#tpu.dimension_semantics<parallel>], iteration_bounds = array<i64: 1>, scalar_prefetch = 0 : i64, scratch_operands = 0 : i64, tpu.core_type = #tpu.core_type<tc>, window_params = [{transform_indices = @transform_0, window_bounds = array<i64: 1, 8, 512>}, {transform_indices = @transform_1, window_bounds = array<i64: 1, 8, 512>}, {transform_indices = @transform_2, window_bounds = array<i64: 8, 512>}]} {
    %cst = arith.constant 0.000000e+00 : f32
    %0 = vector.broadcast %cst : f32 to vector<8x512xf32>
    %c0_i32 = arith.constant 0 : i32
    %1 = arith.index_cast %c0_i32 : i32 to index
    %c0 = arith.constant 0 : index
    %c0_0 = arith.constant 0 : index
    %2 = vector.load %arg1[%1, %c0, %c0_0] : memref<1x8x512xf32, #tpu.memory_space<vmem>>, vector<1x8x512xf32>
    %3 = vector.shape_cast %2 : vector<1x8x512xf32> to vector<8x512xf32>
    %4 = arith.index_cast %c0_i32 : i32 to index
    %c0_1 = arith.constant 0 : index
    %c0_2 = arith.constant 0 : index
    %5 = vector.load %arg2[%4, %c0_1, %c0_2] : memref<1x8x512xf32, #tpu.memory_space<vmem>>, vector<1x8x512xf32>
    %6 = vector.shape_cast %5 : vector<1x8x512xf32> to vector<8x512xf32>
    %cst_3 = arith.constant 0.000000e+00 : f32
    %7 = vector.broadcast %cst_3 : f32 to vector<8x512xf32>
    %8 = arith.maximumf %3, %7 : vector<8x512xf32>
    %9 = arith.mulf %3, %6 : vector<8x512xf32>
    %10 = arith.subf %8, %9 : vector<8x512xf32>
    %11 = math.absf %3 : vector<8x512xf32>
    %cst_4 = arith.constant 0.000000e+00 : f32
    %12 = vector.broadcast %cst_4 : f32 to vector<8x512xf32>
    %13 = arith.subf %12, %11 : vector<8x512xf32>
    %14 = math.exp %13 : vector<8x512xf32>
    %15 = math.log1p %14 : vector<8x512xf32>
    %16 = arith.addf %10, %15 : vector<8x512xf32>
    %cst_5 = arith.constant 0.000000e+00 : f32
    %17 = vector.broadcast %cst_5 : f32 to vector<8x512xf32>
    %18 = arith.subf %17, %16 : vector<8x512xf32>
    %19 = math.exp %18 : vector<8x512xf32>
    %cst_6 = arith.constant 1.000000e+00 : f32
    %20 = vector.broadcast %cst_6 : f32 to vector<8x512xf32>
    %21 = arith.subf %20, %19 : vector<8x512xf32>
    %22 = arith.mulf %21, %21 : vector<8x512xf32>
    %cst_7 = arith.constant 1.000000e+00 : f32
    %23 = vector.broadcast %cst_7 : f32 to vector<8x512xf32>
    %24 = arith.mulf %23, %22 : vector<8x512xf32>
    %25 = arith.mulf %24, %16 : vector<8x512xf32>
    %26 = arith.addf %0, %25 : vector<8x512xf32>
    %c1_i32 = arith.constant 1 : i32
    %c0_8 = arith.constant 0 : index
    %c0_9 = arith.constant 0 : index
    %27 = vector.load %arg3[%c0_8, %c0_9] : memref<8x512xf32, #tpu.memory_space<vmem>>, vector<8x512xf32>
    tpu.vector_store %arg3[%c0_8, %c0_9], %26 {strides = array<i32>} : memref<8x512xf32, #tpu.memory_space<vmem>>, vector<8x512xf32>,
    return
  }
  func.func @transform_0(%arg0: i32) -> (i32, i32, i32) {
    %c0_i32 = arith.constant 0 : i32
    %c0_i32_0 = arith.constant 0 : i32
    %c0_i32_1 = arith.constant 0 : i32
    return %arg0, %c0_i32, %c0_i32_0 : i32, i32, i32
  }
  func.func @transform_1(%arg0: i32) -> (i32, i32, i32) {
    %c0_i32 = arith.constant 0 : i32
    %c0_i32_0 = arith.constant 0 : i32
    %c0_i32_1 = arith.constant 0 : i32
    return %arg0, %c0_i32, %c0_i32_0 : i32, i32, i32
  }
  func.func @transform_2(%arg0: i32) -> (i32, i32) {
    %c0_i32 = arith.constant 0 : i32
    %c0_i32_0 = arith.constant 0 : i32
    return %arg0, %c0_i32 : i32, i32
  }
}

</mosaic_0001>

<bundles_post_ra>
// kernel: tpu_custom_call.1
= control target key start
LH: loop header
LB: loop body
LE: loop exit
PB: predicated region body
PF: predicated region fallthrough
CT: control target
= control target key end

     0   :  { %7 = vsyncpa [#allocation3], 0  ;;  %s334_s0 = inlined_call_operand.hbm [shape: f32[1,8,512], index: 0, kind: input, shape index: {}]   ;;  %s335_s1 = inlined_call_operand.hbm [shape: f32[1,8,512], index: 1, kind: input, shape index: {}]   ;;  %s336_s2 = inlined_call_operand.hbm [shape: f32[8,512], index: 2, kind: output, shape index: {}]  }
   0x1   :  { %8 = vsyncpa [#allocation6], 0 }
   0x2   :  { %9 = vsyncpa [#allocation4], 0  ;;  %s259_s9 = smov [#allocation2]   ;;  %s260_s11 = smov [#allocation5]  }
   0x3   :  { %s16_s10 = sshll.u32 %s259_s9, 4  ;;  %s26_s12 = sshll.u32 %s260_s11, 4  ;;  %s17_s10 = int_to_ptr.vmem [resolvable:$true] %s16_s10  ;;  %s27_s12 = int_to_ptr.vmem [resolvable:$true] %s26_s12 }
   0x4   :  { %s187_s15 = scalar_lea.hbm %s334_s0, 512 }
   0x5   :  { %p188_p0 = scmp.ne.s32.totalorder %s334_s0, %s187_s15  ;;  %p191_p1 = scmp.lt.u32.totalorder %s187_s15, %s334_s0 }
   0x7   :  { %p193_p2 = pnand %p191_p1, %p188_p0 }
   0x9   :  { %196 = shalt.err (!%p193_p2)
}
   0xa   :  { %s197_s20 = scalar_lea.vmem %s17_s10, 512  ;;  %p202_p4 = scmp.lt.s32.totalorder %s17_s10, %s17_s10 }
   0xb   :  { %p198_p3 = scmp.ne.s32.totalorder %s17_s10, %s197_s20  ;;  %p203_p5 = scmp.lt.s32.totalorder %s197_s20, %s197_s20 }
   0xd   :  { %p204_p6 = por %p203_p5, %p202_p4 }
   0xf   :  { %p205_p7 = pnand %p204_p6, %p198_p3 }
  0x11   :  { %208 = shalt.err (!%p205_p7)
}
  0x12   :  { %19 = dma.hbm_to_vmem [thread:$0]  %s334_s0, 512, %s17_s10, [#allocation3]  }
  0x13   :  { %s209_s25 = scalar_lea.hbm %s335_s1, 512 }
  0x14   :  { %p210_p8 = scmp.ne.s32.totalorder %s335_s1, %s209_s25  ;;  %p213_p9 = scmp.lt.u32.totalorder %s209_s25, %s335_s1 }
  0x16   :  { %p215_p10 = pnand %p213_p9, %p210_p8 }
  0x18   :  { %218 = shalt.err (!%p215_p10)
}
  0x19   :  { %s219_s30 = scalar_lea.vmem %s27_s12, 512  ;;  %p224_p12 = scmp.lt.s32.totalorder %s27_s12, %s27_s12 }
  0x1a   :  { %p220_p11 = scmp.ne.s32.totalorder %s27_s12, %s219_s30  ;;  %p225_p13 = scmp.lt.s32.totalorder %s219_s30, %s219_s30 }
  0x1c   :  { %p226_p0 = por %p225_p13, %p224_p12 }
  0x1e   :  { %p227_p1 = pnand %p226_p0, %p220_p11 }
  0x20   :  { %230 = shalt.err (!%p227_p1)
}
  0x21   :  { %29 = dma.hbm_to_vmem [thread:$0]  %s335_s1, 512, %s27_s12, [#allocation6]  }
  0x22   :  { %253 = dma.done.wait [#allocation3], 512  }
  0x23   :  { %254 = vsyncadd [#allocation3], 4294966784 }
  0x24   :  { %255 = dma.done.wait [#allocation6], 512  }
  0x25   :  { %256 = vsyncadd [#allocation6], 4294966784  ;;  %v36_v0 = vld [vmem:[#allocation2] sm:$0xff]  ;;  %v301_v1 = vld [vmem:[#allocation2 + $0x8] sm:$0xff]  ;;  %s261_s1 = smov [#allocation7]  }
  0x26   :  { %v56_v2 = vand.u32 2147483647, %v36_v0  ;;  %v303_v3 = vld [vmem:[#allocation2 + $0x10] sm:$0xff]  ;;  %v57_v4 = vand.u32 2147483647, %v301_v1  ;;  %v307_v7 = vld [vmem:[#allocation2 + $0x18] sm:$0xff] }
  0x27   :  { %v58_v5 = vand.u32 2147483647, %v303_v3  ;;  %v59_v11 = vand.u32 2147483647, %v307_v7  ;;  %v40_v24 = vld [vmem:[#allocation5] sm:$0xff]  ;;  %v41_v28 = vld [vmem:[#allocation5 + $0x8] sm:$0xff] }
  0x28   :  { %v60_v6 = vsub.f32 0.0, %v56_v2  ;;  %v61_v8 = vsub.f32 0.0, %v57_v4  ;;  %v44_v29 = vmax.f32 %v36_v0, 0.0  ;;  %v48_v30 = vmul.f32 %v40_v24, %v36_v0  ;;  %v42_v32 = vld [vmem:[#allocation5 + $0x10] sm:$0xff]  ;;  %v43_v40 = vld [vmem:[#allocation5 + $0x18] sm:$0xff]  ;;  %s150_s4 = sshll.u32 %s261_s1, 4  ;;  %s151_s4 = int_to_ptr.vmem [resolvable:$true] %s150_s4 }
  0x29   :  { %v62_v9 = vsub.f32 0.0, %v58_v5  ;;  %v63_v14 = vsub.f32 0.0, %v59_v11  ;;  %v45_v36 = vmax.f32 %v301_v1, 0.0  ;;  %v49_v37 = vmul.f32 %v41_v28, %v301_v1  ;;  %s231_s5 = scalar_lea.vmem %s151_s4, 512  ;;  %p236_p3 = scmp.lt.s32.totalorder %s151_s4, %s151_s4 }
  0x2a   :  { %v64_v10 = vmul.f32 1.442695, %v60_v6  ;;  %v66_v12 = vmul.f32 1.442695, %v61_v8  ;;  %v46_v41 = vmax.f32 %v303_v3, 0.0  ;;  %v50_v42 = vmul.f32 %v42_v32, %v303_v3  ;;  %p232_p2 = scmp.ne.s32.totalorder %s151_s4, %s231_s5  ;;  %p237_p4 = scmp.lt.s32.totalorder %s231_s5, %s231_s5 }
  0x2b   :  { %v68_v13 = vmul.f32 1.442695, %v62_v9  ;;  %v70_v15 = vmul.f32 1.442695, %v63_v14  ;;  %v52_v44 = vsub.f32 %v44_v29, %v48_v30  ;;  %v47_v46 = vmax.f32 %v307_v7, 0.0 }
  0x2c   :  { %163 = vpow2.f32 %v64_v10  ;;  %v51_v51 = vmul.f32 %v43_v40, %v307_v7  ;;  %v53_v55 = vsub.f32 %v45_v36, %v49_v37  ;;  %v54_v59 = vsub.f32 %v46_v41, %v50_v42  ;;  %p238_p5 = por %p237_p4, %p236_p3 }
  0x2d   :  { %165 = vpow2.f32 %v66_v12 }
  0x2e   :  { %167 = vpow2.f32 %v68_v13  ;;  %v55_v2 = vsub.f32 %v47_v46, %v51_v51  ;;  %p239_p6 = pnand %p238_p5, %p232_p2 }
  0x2f   :  { %169 = vpow2.f32 %v70_v15 }
  0x36   :  { %v164_v16 = vpop.eup %163 }
  0x37   :  { %v166_v17 = vpop.eup %165  ;;  %v72_v18 = vadd.f32 1.0, %v164_v16  ;;  %v75_v23 = vmul.f32 -0.5, %v164_v16  ;;  %v78_v34 = vand.u32 2147483647, %v164_v16 }
  0x38   :  { %v168_v19 = vpop.eup %167  ;;  %v81_v20 = vadd.f32 1.0, %v166_v17  ;;  %v84_v25 = vmul.f32 -0.5, %v166_v17  ;;  %v87_v38 = vand.u32 2147483647, %v166_v17 }
  0x39   :  { %171 = vlog2.f32 %v72_v18  ;;  %v90_v21 = vadd.f32 1.0, %v168_v19  ;;  %v170_v22 = vpop.eup %169  ;;  %v93_v27 = vmul.f32 -0.5, %v168_v19  ;;  %v76_v31 = vadd.f32 1.0, %v75_v23 }
  0x3a   :  { %173 = vlog2.f32 %v81_v20  ;;  %v99_v26 = vadd.f32 1.0, %v170_v22  ;;  %v102_v33 = vmul.f32 -0.5, %v170_v22  ;;  %v85_v35 = vadd.f32 1.0, %v84_v25 }
  0x3b   :  { %175 = vlog2.f32 %v90_v21  ;;  %v94_v39 = vadd.f32 1.0, %v93_v27  ;;  %v96_v43 = vand.u32 2147483647, %v168_v19  ;;  %v77_v45 = vmul.f32 %v164_v16, %v76_v31 }
  0x3c   :  { %177 = vlog2.f32 %v99_v26  ;;  %v103_v47 = vadd.f32 1.0, %v102_v33  ;;  %vm315_vm0 = vcmp.lt.f32.partialorder %v78_v34, 0.0004427343  ;;  %v86_v50 = vmul.f32 %v166_v17, %v85_v35 }
  0x3d   :  { %v105_v52 = vand.u32 2147483647, %v170_v22  ;;  %vm88_vm1 = vcmp.lt.f32.partialorder %v87_v38, 0.0004427343  ;;  %v95_v56 = vmul.f32 %v168_v19, %v94_v39  ;;  %vm97_vm2 = vcmp.lt.f32.partialorder %v96_v43, 0.0004427343 }
  0x3e   :  { %v104_v62 = vmul.f32 %v170_v22, %v103_v47 }
  0x3f   :  { %vm106_vm3 = vcmp.lt.f32.partialorder %v105_v52, 0.0004427343 }
  0x43   :  { %v172_v48 = vpop.eup %171 }
  0x44   :  { %v174_v53 = vpop.eup %173  ;;  %v74_v54 = vmul.f32 0.6931472, %v172_v48 }
  0x45   :  { %v176_v57 = vpop.eup %175  ;;  %v83_v58 = vmul.f32 0.6931472, %v174_v53 }
  0x46   :  { %v80_v60 = vsel %vm315_vm0, %v77_v45, %v74_v54  ;;  %v92_v61 = vmul.f32 0.6931472, %v176_v57  ;;  %v178_v63 = vpop.eup %177 }
  0x47   :  { %v108_v0 = vadd.f32 %v80_v60, %v52_v44  ;;  %v89_v1 = vsel %vm88_vm1, %v86_v50, %v83_v58  ;;  %v101_v5 = vmul.f32 0.6931472, %v178_v63 }
  0x48   :  { %v109_v3 = vadd.f32 %v89_v1, %v53_v55  ;;  %v98_v4 = vsel %vm97_vm2, %v95_v56, %v92_v61 }
  0x49   :  { %v112_v6 = vsub.f32 0.0, %v108_v0  ;;  %v110_v7 = vadd.f32 %v98_v4, %v54_v59  ;;  %v107_v9 = vsel %vm106_vm3, %v104_v62, %v101_v5 }
  0x4a   :  { %v113_v8 = vsub.f32 0.0, %v109_v3  ;;  %v111_v12 = vadd.f32 %v107_v9, %v55_v2 }
  0x4b   :  { %v116_v10 = vmul.f32 1.442695, %v112_v6  ;;  %v114_v11 = vsub.f32 0.0, %v110_v7 }
  0x4c   :  { %v118_v13 = vmul.f32 1.442695, %v113_v8  ;;  %v115_v15 = vsub.f32 0.0, %v111_v12 }
  0x4d   :  { %179 = vpow2.f32 %v116_v10  ;;  %v120_v14 = vmul.f32 1.442695, %v114_v11 }
  0x4e   :  { %181 = vpow2.f32 %v118_v13  ;;  %v122_v16 = vmul.f32 1.442695, %v115_v15 }
  0x4f   :  { %183 = vpow2.f32 %v120_v14 }
  0x50   :  { %185 = vpow2.f32 %v122_v16 }
  0x57   :  { %v180_v17 = vpop.eup %179 }
  0x58   :  { %v182_v18 = vpop.eup %181  ;;  %v124_v19 = vsub.f32 1.0, %v180_v17 }
  0x59   :  { %v184_v20 = vpop.eup %183  ;;  %v125_v21 = vsub.f32 1.0, %v182_v18 }
  0x5a   :  { %v128_v22 = vmul.f32 %v124_v19, %v124_v19  ;;  %v126_v23 = vsub.f32 1.0, %v184_v20  ;;  %v186_v24 = vpop.eup %185 }
  0x5b   :  { %v129_v25 = vmul.f32 %v125_v21, %v125_v21  ;;  %v127_v28 = vsub.f32 1.0, %v186_v24 }
  0x5c   :  { %v132_v26 = vmul.f32 %v128_v22, %v108_v0  ;;  %v130_v27 = vmul.f32 %v126_v23, %v126_v23 }
  0x5d   :  { %v133_v29 = vmul.f32 %v129_v25, %v109_v3  ;;  %v131_v31 = vmul.f32 %v127_v28, %v127_v28 }
  0x5e   :  { %140 = vst [vmem:[#allocation7] sm:$0xff] %v132_v26  ;;  %v134_v30 = vmul.f32 %v130_v27, %v110_v7 }
  0x5f   :  { %141 = vst [vmem:[#allocation7 + $0x8] sm:$0xff] %v133_v29  ;;  %v135_v32 = vmul.f32 %v131_v31, %v111_v12 }
  0x60   :  { %142 = vst [vmem:[#allocation7 + $0x10] sm:$0xff] %v134_v30 }
  0x61   :  { %143 = vst [vmem:[#allocation7 + $0x18] sm:$0xff] %v135_v32 }
  0x62   :  { %242 = shalt.err (!%p239_p6)
}
  0x63   :  { %s243_s8 = scalar_lea.hbm %s336_s2, 512 }
  0x64   :  { %p244_p7 = scmp.ne.s32.totalorder %s336_s2, %s243_s8  ;;  %p247_p8 = scmp.lt.u32.totalorder %s243_s8, %s336_s2 }
  0x66   :  { %p249_p9 = pnand %p247_p8, %p244_p7 }
  0x68   :  { %252 = shalt.err (!%p249_p9)
}
  0x69   :  { %153 = dma.vmem_to_hbm [thread:$0]  %s151_s4, 512, %s336_s2, [#allocation4]  }
  0x6a   :  { %257 = dma.done.wait [#allocation4], 512  }
  0x6b   :  { %258 = vsyncadd [#allocation4], 4294966784 }
  0x6c   :  { %157 = vsyncpa [#allocation3], 1 }
  0x6d   :  { %158 = vsyncpa [#allocation6], 1 }
  0x6e   :  { %159 = vsyncpa [#allocation4], 1 }

</bundles_post_ra>
